<compile_context>
chip_gen: v5e
topology: v5e:2x2
jax: 0.10.0
libtpu: 0.0.40
codegen_flags: <defaults>
</compile_context>

<pallas_src>
import jax
import jax.numpy as jnp
from jax.experimental import pallas as pl
from jax.experimental.pallas import tpu as pltpu


# ---------------------------------------------------------------------------
# Kernel
# ---------------------------------------------------------------------------
def _mixer_kernel(obs_ref, w1_ref, b1_ref, w2_ref, b2sum_ref, out_ref):
    # obs_ref: (tile_n, A*D) f32    w1_ref: (A*D, A*H) bf16
    # b1_ref / w2_ref: (1, A*H) f32 b2sum_ref: (1,) f32 in SMEM
    x = obs_ref[...].astype(jnp.bfloat16)  # single-pass bf16 MXU matmul
    h = jnp.tanh(
        jnp.dot(x, w1_ref[...], preferred_element_type=jnp.float32) + b1_ref[...]
    )  # (tile_n, A*H) f32
    # Width-1 value head: VPU multiply + XLU lane reduction, not a 1-col MXU matmul.
    v = jnp.sum(h * w2_ref[...], axis=-1, keepdims=True)  # (tile_n, 1)
    out_ref[...] = (v + b2sum_ref[0]).astype(out_ref.dtype)


# ---------------------------------------------------------------------------
# Wrapper
# ---------------------------------------------------------------------------
def _round_up(x, m):
    return ((x + m - 1) // m) * m


# Lane-padded VMEM footprint per row: obs (24 -> 128 lanes) and out (1 -> 128
# lanes) each cost 512 B/row; double-buffered that's ~2 KiB/row.  tile_n=8192
# => ~16 MiB of pipeline buffers, comfortably inside v7x's 64 MiB VMEM.
_MAX_TILE_N = 8192


def _choose_tile_n(n):
    # Big tiles to amortize the ~0.35 us per-grid-step overhead; keep >= 2
    # grid steps so the "parallel" axis shards across both v7x TensorCores;
    # cap by the lane-padded VMEM budget above.
    if n <= 8:
        return 8
    half = _round_up(pl.cdiv(n, 2), 8)
    return max(8, min(_MAX_TILE_N, half, _round_up(n, 8)))


def fuse_mixer_params(w1, b1, w2, b2):
    """One-time weight fusion (do this at module init, not per forward).

    w1: (A, D, H), b1: (A, 1, H), w2: (A, H, 1), b2: (A, 1, 1)
    Returns block-diagonal W1 in bf16, concatenated b1/w2 rows, scalar sum(b2).
    Block-diag storage is O(A^2*D*H) -- only sensible for small agent counts.
    """
    n_agents, ob_dim, hidden = w1.shape
    ad, ah = n_agents * ob_dim, n_agents * hidden
    eye = jnp.eye(n_agents, dtype=w1.dtype)
    w1_bd = jnp.einsum("adh,ab->adbh", w1, eye).reshape(ad, ah).astype(jnp.bfloat16)
    b1_cat = b1.reshape(1, ah).astype(jnp.float32)
    w2_row = w2.reshape(1, ah).astype(jnp.float32)
    b2_sum = b2.sum().reshape(1).astype(jnp.float32)
    return w1_bd, b1_cat, w2_row, b2_sum


def mixer_forward_fused(obs, lens, w1_bd, b1_cat, w2_row, b2_sum):
    """obs: (N, A*D) f32 -> (N,) f32, sum of per-agent critic values."""
    del lens  # unused by the synthetic (non-recurrent) MLP critics
    n, ad = obs.shape
    ah = w1_bd.shape[1]

    tile_n = _choose_tile_n(n)
    # Partial final block: rows are independent, garbage OOB input rows only
    # affect rows whose output stores are masked away -- no pad copy of obs.
    grid = (pl.cdiv(n, tile_n),)

    cost = pl.CostEstimate(
        flops=2 * n * ad * ah + 2 * n * ah,
        transcendentals=n * ah,
        bytes_accessed=n * ad * 4 + n * 4 + ad * ah * 2 + 2 * ah * 4,
    )

    out = pl.pallas_call(
        _mixer_kernel,
        out_shape=jax.ShapeDtypeStruct((n, 1), jnp.float32),
        grid=grid,
        in_specs=[
            pl.BlockSpec((tile_n, ad), lambda i: (i, 0)),       # obs batch tile
            pl.BlockSpec((ad, ah), lambda i: (0, 0)),           # block-diag W1 (bf16)
            pl.BlockSpec((1, ah), lambda i: (0, 0)),            # b1 row
            pl.BlockSpec((1, ah), lambda i: (0, 0)),            # w2 row
            pl.BlockSpec(memory_space=pltpu.MemorySpace.SMEM),  # sum(b2) scalar
        ],
        out_specs=pl.BlockSpec((tile_n, 1), lambda i: (i, 0)),
        compiler_params=pltpu.CompilerParams(
            dimension_semantics=("parallel",),
            vmem_limit_bytes=32 * 1024 * 1024,
        ),
        cost_estimate=cost,
    )(obs, w1_bd, b1_cat, w2_row, b2_sum)

    return out[:, 0]


def make_mixer_forward(w1, b1, w2, b2):
    """Hoists weight fusion out of the per-call path; returns jitted forward."""
    fused = fuse_mixer_params(w1, b1, w2, b2)

    @jax.jit
    def forward(obs, lens):
        return mixer_forward_fused(obs, lens, *fused)

    return forward


# ---------------------------------------------------------------------------
# Reference + test
# ---------------------------------------------------------------------------
def _reference_forward(obs, w1, b1, w2, b2):
    n_agents, ob_dim, _ = w1.shape
    outs = []
    for i in range(n_agents):
        x = obs[:, i * ob_dim:(i + 1) * ob_dim]
        h = jnp.tanh(x @ w1[i] + b1[i])
        v = h @ w2[i] + b2[i]
        outs.append(v[:, 0])
    return jnp.stack(outs, axis=1).sum(axis=1)


if __name__ == "__main__":
    key = jax.random.PRNGKey(0)
    n_agents = 3
    ob_dim = 8
    hidden = 32
    batch = 19  # not a tile multiple: exercises the un-padded partial final block

    k_obs, k_w1, k_b1, k_w2, k_b2 = jax.random.split(key, 5)

    obs = jax.random.normal(k_obs, (batch, n_agents * ob_dim), dtype=jnp.float32)
    lens = jnp.full((batch,), 1, dtype=jnp.int32)  # API parity; unused

    # Deterministic synthetic per-agent critic parameters (stacked on agent axis).
    w1 = jax.random.normal(k_w1, (n_agents, ob_dim, hidden), dtype=jnp.float32) * 0.1
    b1 = jax.random.normal(k_b1, (n_agents, 1, hidden), dtype=jnp.float32) * 0.01
    w2 = jax.random.normal(k_w2, (n_agents, hidden, 1), dtype=jnp.float32) * 0.1
    b2 = jax.random.normal(k_b2, (n_agents, 1, 1), dtype=jnp.float32) * 0.01

    forward = make_mixer_forward(w1, b1, w2, b2)
    out = jax.block_until_ready(forward(obs, lens))

    ref = _reference_forward(obs, w1, b1, w2, b2)
    assert out.shape == (batch,)
    # bf16 first matmul changes numerics vs the f32 reference (~1e-2 relative).
    assert jnp.allclose(out, ref, atol=5e-2, rtol=5e-2), (out, ref)

    print("KERNEL_OK")
</pallas_src>

<mosaic_0001>
module attributes {stable_mosaic.version = 11 : i64} {
  func.func @_mixer_kernel(%arg0: i32, %arg1: memref<16x24xf32, #tpu.memory_space<vmem>>, %arg2: memref<24x96xbf16, #tpu.memory_space<vmem>>, %arg3: memref<1x96xf32, #tpu.memory_space<vmem>>, %arg4: memref<1x96xf32, #tpu.memory_space<vmem>>, %arg5: memref<1xf32, #tpu.memory_space<smem>>, %arg6: memref<16x1xf32, #tpu.memory_space<vmem>>) attributes {dimension_semantics = [#tpu.dimension_semantics<parallel>], iteration_bounds = array<i64: 2>, scalar_prefetch = 0 : i64, scratch_operands = 0 : i64, tpu.core_type = #tpu.core_type<tc>, window_params = [{transform_indices = @transform_0, window_bounds = array<i64: 16, 24>}, {pipeline_mode = #tpu.pipeline_mode<synchronous>, transform_indices = @transform_1, window_bounds = array<i64: 24, 96>}, {pipeline_mode = #tpu.pipeline_mode<synchronous>, transform_indices = @transform_2, window_bounds = array<i64: 1, 96>}, {pipeline_mode = #tpu.pipeline_mode<synchronous>, transform_indices = @transform_3, window_bounds = array<i64: 1, 96>}, {transform_indices = @transform_4, window_bounds = array<i64: 1>}, {transform_indices = @transform_5, window_bounds = array<i64: 16, 1>}]} {
    %c0 = arith.constant 0 : index
    %c0_0 = arith.constant 0 : index
    %0 = vector.load %arg1[%c0, %c0_0] : memref<16x24xf32, #tpu.memory_space<vmem>>, vector<16x24xf32>
    %1 = arith.truncf %0 : vector<16x24xf32> to vector<16x24xbf16>
    %c0_1 = arith.constant 0 : index
    %c0_2 = arith.constant 0 : index
    %2 = vector.load %arg2[%c0_1, %c0_2] : memref<24x96xbf16, #tpu.memory_space<vmem>>, vector<24x96xbf16>
    %cst = arith.constant dense<0.000000e+00> : vector<16x96xf32>
    %3 = tpu.matmul %1, %2, %cst {dimension_numbers = #tpu.dot_dimension_numbers<[1], [0], [0], [1], [0, 0, 1, 1], [], []>} : vector<16x24xbf16>, vector<24x96xbf16>, vector<16x96xf32> -> vector<16x96xf32>
    %c0_3 = arith.constant 0 : index
    %c0_4 = arith.constant 0 : index
    %4 = vector.load %arg3[%c0_3, %c0_4] : memref<1x96xf32, #tpu.memory_space<vmem>>, vector<1x96xf32>
    %5 = vector.broadcast %4 : vector<1x96xf32> to vector<16x96xf32>
    %6 = arith.addf %3, %5 : vector<16x96xf32>
    %7 = math.tanh %6 : vector<16x96xf32>
    %c0_5 = arith.constant 0 : index
    %c0_6 = arith.constant 0 : index
    %8 = vector.load %arg4[%c0_5, %c0_6] : memref<1x96xf32, #tpu.memory_space<vmem>>, vector<1x96xf32>
    %9 = vector.broadcast %8 : vector<1x96xf32> to vector<16x96xf32>
    %10 = arith.mulf %7, %9 : vector<16x96xf32>
    %cst_7 = arith.constant dense<0.000000e+00> : vector<16xf32>
    %11 = vector.multi_reduction <add>, %10, %cst_7 [1] : vector<16x96xf32> to vector<16xf32>
    %12 = vector.shape_cast %11 : vector<16xf32> to vector<16x1xf32>
    %c0_8 = arith.constant 0 : index
    %13 = memref.load %arg5[%c0_8] : memref<1xf32, #tpu.memory_space<smem>>
    %14 = vector.broadcast %13 : f32 to vector<16x1xf32>
    %15 = arith.addf %12, %14 : vector<16x1xf32>
    %c0_9 = arith.constant 0 : index
    %c0_10 = arith.constant 0 : index
    %16 = vector.load %arg6[%c0_9, %c0_10] : memref<16x1xf32, #tpu.memory_space<vmem>>, vector<16x1xf32>
    tpu.vector_store %arg6[%c0_9, %c0_10], %15 {strides = array<i32>} : memref<16x1xf32, #tpu.memory_space<vmem>>, vector<16x1xf32>,
    return
  }
  func.func @transform_0(%arg0: i32) -> (i32, i32) {
    %c0_i32 = arith.constant 0 : i32
    %c0_i32_0 = arith.constant 0 : i32
    return %arg0, %c0_i32 : i32, i32
  }
  func.func @transform_1(%arg0: i32) -> (i32, i32) {
    %c0_i32 = arith.constant 0 : i32
    %c0_i32_0 = arith.constant 0 : i32
    %c0_i32_1 = arith.constant 0 : i32
    return %c0_i32, %c0_i32_0 : i32, i32
  }
  func.func @transform_2(%arg0: i32) -> (i32, i32) {
    %c0_i32 = arith.constant 0 : i32
    %c0_i32_0 = arith.constant 0 : i32
    %c0_i32_1 = arith.constant 0 : i32
    return %c0_i32, %c0_i32_0 : i32, i32
  }
  func.func @transform_3(%arg0: i32) -> (i32, i32) {
    %c0_i32 = arith.constant 0 : i32
    %c0_i32_0 = arith.constant 0 : i32
    %c0_i32_1 = arith.constant 0 : i32
    return %c0_i32, %c0_i32_0 : i32, i32
  }
  func.func @transform_4(%arg0: i32) -> i32 {
    %c0_i32 = arith.constant 0 : i32
    %c0_i32_0 = arith.constant 0 : i32
    return %c0_i32 : i32
  }
  func.func @transform_5(%arg0: i32) -> (i32, i32) {
    %c0_i32 = arith.constant 0 : i32
    %c0_i32_0 = arith.constant 0 : i32
    return %arg0, %c0_i32 : i32, i32
  }
}

</mosaic_0001>

<bundles_post_ra>
// kernel: forward.1
= control target key start
LH: loop header
LB: loop body
LE: loop exit
PB: predicated region body
PF: predicated region fallthrough
CT: control target
= control target key end

     0   :  { %s1133_s0 = inlined_call_operand.hbm [shape: f32[19,24], index: 0, kind: input, shape index: {}]   ;;  %s1134_s1 = inlined_call_operand.hbm [shape: bf16[24,96], index: 1, kind: input, shape index: {}]   ;;  %s1135_s2 = inlined_call_operand.vmem [shape: f32[1,96], index: 2, kind: input, shape index: {}]   ;;  %s1136_s3 = inlined_call_operand.vmem [shape: f32[1,96], index: 3, kind: input, shape index: {}]   ;;  %s1137_s4 = inlined_call_operand.<no memory space> [shape: f32[1], index: 4, kind: input, shape index: {}]   ;;  %s1138_s5 = inlined_call_operand.vmem [shape: f32[19,1], index: 5, kind: output, shape index: {}]  }
   0x1   :  { %10 = sst [smem:[#allocation2]] %s1137_s4 }
   0x2   :  { %11 = vsyncpa [#allocation4], 0 }
   0x3   :  { %13 = vsyncpa [#allocation4 + $0x1], 0 }
   0x4   :  { %14 = vsyncpa [#allocation6], 0  ;;  %s953_s20 = smov 0   ;;  %s955_s21 = smov 0  }
   0x5   :  { %s957_s22 = smov 0   ;;  %s959_s23 = smov 0  }
   0x6 LB: > { %s972_s4 = sadd.s32 4294967295, %s880_s23   ;;  %s975_s24 = sadd.s32 1, %s880_s23   ;;  %s880_s23 = sphi %s959_s23, %s1150_s23   ;;  %s876_s22 = sphi %s957_s22, %s1149_s22   ;;  %s872_s21 = sphi %s955_s21, %s1148_s21   ;;  %s868_s20 = sphi %s953_s20, %s1147_s20  }
   0x7   : > { %s24_s25 = ssub.s32 %s880_s23, %s975_s24  ;;  %s27_s26 = sadd.s32 1, %s876_s22 }
   0x8   : > { %p25_p0 = scmp.eq.s32.totalorder %s24_s25, 0  ;;  %p34_p1 = scmp.ne.s32.totalorder %s876_s22, %s872_s21 }
   0x9   : > { %p35_p2 = scmp.eq.s32.totalorder %s880_s23, 0  ;;  %p40_p3 = scmp.ne.s32.totalorder %s872_s21, %s868_s20 }
   0xa   : > { %s985_s27 = scalar_select %p25_p0, %s876_s22, %s27_s26  }
   0xb   : > { %p987_p4 = por %p35_p2, %p34_p1  ;;  %p1139_p5 = scmp.eq.s32.totalorder %s972_s4, 0 }
   0xc   : > { %p148_p6 = scmp.eq.s32.totalorder %s972_s4, 1  ;;  %p582_p7 = scmp.ge.s32.totalorder %s880_s23, 1 }
   0xd   : > { %p996_p8 = por %p1139_p5, %p40_p3  ;;  %p161_p9 = scmp.lt.s32.totalorder %s880_s23, 3 }
   0xe   : > { %p1001_p10 = por %p148_p6, %p34_p1  ;;  %s172_s9 = sshll.u32 %s1134_s1, 4  ;;  %s173_s9 = int_to_ptr.hbm [resolvable:$true] %s172_s9 }
   0xf   : > { %p1005_p11 = pnand %p582_p7, %p161_p9  ;;  %s914_s10 = smov [#allocation5]  }
  0x10   : > { %s174_s11 = sshll.u32 %s914_s10, 4  ;;  %s915_s12 = smov 64   ;;  %s175_s11 = int_to_ptr.vmem [resolvable:$true] %s174_s11 }
  0x11   : > { %p628_p12 = pneg %p1005_p11  ;;  %s916_s13 = smov 4  }
  0x12   : > { %p584_p0 = scmp.ge.s32.totalorder %s880_s23, 2 }
  0x13   : > { %p629_p13 = pnand %p628_p12, %p1139_p5 }
  0x14   : > { %193 = sbr.rel (%p584_p0) target bundleno = 61 (0x3d), region = 32 }
  0x15   : > { %631 = dma.hbm_to_vmem [thread:$0]  (!%p629_p13), %s173_s9, 192, %s175_s11, [#allocation6], %s915_s12, %s915_s12, %s916_s13  }
  0x19   : > { %196 = sbr.rel (!%p987_p4) target bundleno = 61 (0x3d), region = 36  ;;  %s197_s14 = sand.u32 (%p987_p4), 1, %s876_s22  }
  0x1a   : > { %s586_s15 = sshll.u32 (%p987_p4), %s880_s23, 1  ;;  %s585_s16 = sshll.u32 (%p987_p4), %s197_s14, 4 }
  0x1b   : > { %s203_s17 = ssub.s32 (%p987_p4), 3, %s586_s15  ;;  %s1024_s25 = scalar_lea.sflag (%p987_p4), [#allocation4], %s197_s14 }
  0x1c   : > { %p204_p1 = scmp.lt.s32.totalorder (%p987_p4), %s203_s17, 2  ;;  %s201_s26 = scalar_lea.vmem (%p987_p4), [#allocation3], %s585_s16 }
  0x1e   : > { %s1152_s17 = smov (!%p204_p1, %s203_s17), 2 }
  0x1f   : > { %s587_s18 = sshll.u32 %s1152_s17, 3 }
  0x20   : > { %s207_s19 = ssub.s32 16, %s587_s18 }
  0x21   : > { %s208_s20 = sshll.u32 %s207_s19, 4 }
  0x22   : > { %209 = vsyncadd %s1024_s25, %s208_s20  ;;  %p1027_p2 = scmp.ne.s32.totalorder %s587_s18, 0  ;;  %s618_s7 = sshll.u32 %s880_s23, 4 }
  0x23   : > { %s212_s10 = scalar_lea.hbm %s1133_s0, %s618_s7  ;;  %s1035_s11 = sshll.u32 %s201_s26, 4  ;;  %s217_s11 = int_to_ptr.vmem [resolvable:$true] %s1035_s11 }
  0x24   : > { %s214_s12 = sshll.u32 %s212_s10, 4  ;;  %s591_s13 = sshll.u32 %s1152_s17, 7  ;;  %s1038_s12 = int_to_ptr.hbm [resolvable:$true] %s214_s12 }
  0x25   : > { %s771_s14 = sshra.s32 %s1038_s12, 4  ;;  %s773_s15 = sshrl.u32 %s591_s13, 4  ;;  %s772_s14 = int_to_ptr.hbm [resolvable:$true] %s771_s14 }
  0x26   : > { %s778_s16 = scalar_lea.hbm %s772_s14, %s773_s15  ;;  %s782_s19 = scalar_lea.hbm %s1133_s0, 24 }
  0x27   : > { %p779_p3 = scmp.ne.s32.totalorder %s772_s14, %s778_s16  ;;  %p783_p7 = scmp.lt.s32.totalorder %s772_s14, %s1133_s0 }
  0x28   : > { %p784_p9 = scmp.lt.s32.totalorder %s782_s19, %s778_s16 }
  0x29   : > { %p780_p4 = pnand %p779_p3, %p1027_p2 }
  0x2a   : > { %p785_p12 = por %p784_p9, %p783_p7 }
  0x2b   : > { %p781_p6 = pneg %p780_p4 }
  0x2d   : > { %p786_p13 = pnand %p785_p12, %p781_p6 }
  0x2f   : > { %789 = shalt.err (!%p786_p13)
}
  0x30   : > { %s790_s7 = sshra.s32 %s217_s11, 4  ;;  %s917_s9 = smov [#allocation3]   ;;  %s791_s7 = int_to_ptr.vmem [resolvable:$true] %s790_s7 }
  0x31   : > { %s797_s8 = scalar_lea.vmem %s791_s7, %s773_s15  ;;  %s801_s10 = scalar_lea.vmem %s917_s9, 32 }
  0x32   : > { %p798_p0 = scmp.ne.s32.totalorder %s791_s7, %s797_s8  ;;  %p803_p4 = scmp.lt.s32.totalorder %s801_s10, %s797_s8 }
  0x34   : > { %p799_p1 = pnand %p798_p0, %p1027_p2 }
  0x36   : > { %p800_p3 = pneg %p799_p1 }
  0x38   : > { %p805_p5 = pnand %p803_p4, %p800_p3 }
  0x3a   : > { %808 = shalt.err (!%p805_p5)
}
  0x3b   : > { %s918_s14 = smov 128   ;;  %s919_s16 = smov 8  }
  0x3c   : > { %222 = dma.hbm_to_vmem [thread:$0]  (%p1027_p2), %s1038_s12, %s591_s13, %s217_s11, %s1024_s25, %s918_s14, %s918_s14, %s919_s16  }
  0x3d PF: > { %228 = sbr.rel (%p1005_p11) target bundleno = 387 (0x183), region = 40  ;;  %s230_s15 = sand.u32 (!%p1005_p11), 1, %s872_s21  }
  0x3e   : > { %s1067_s23 = sshll.u32 (!%p1005_p11), %s230_s15, 4  ;;  %s231_s18 = scalar_lea.sflag (!%p1005_p11), [#allocation4], %s230_s15 }
  0x3f   : > { %s234_s19 = scalar_lea.vmem (!%p1005_p11), [#allocation3], %s1067_s23 }
  0x42   : > { %859 = dma.done.wait (%p996_p8), %s231_s18, 256  }
  0x43   : > { %861 = vsyncadd (%p996_p8), %s231_s18, 4294967040  ;;  %p1145_p5 = scmp.eq.s32.totalorder %s972_s4, 0 }
  0x45   : > { %863 = dma.done.wait (%p1145_p5), [#allocation6], 192   ;;  %p1146_p2 = pmov %p1145_p5 }
  0x46   : > { %v282_v0 = vld [vmem:[#allocation5 + $0x8] sm:$0xf]  ;;  %vm300_vm0 = vcmask 1043456   ;;  %v619_v4 = vld [vmem:[#allocation5] sm:$0xff]  ;;  %vm296_vm1 = vcmask 195584   ;;  %vm326_vm2 = vcmask 785408  }
  0x47   : > { %865 = vsyncadd (%p1146_p2), [#allocation6], 4294967104  ;;  %v292_v1 = vunpack.c.l.b16 %v282_v0  ;;  %v277_v5 = vld [vmem:[%s234_s19] sm:$0xff]  ;;  %v278_v6 = vld [vmem:[%s234_s19 + $0x8] sm:$0xff]  ;;  %s333_s28 = sld [smem:[#allocation2]]  ;;  %vm337_vm3 = vcmask 7168  }
  0x48   : > { %v279_v7 = vpack.c.bf16 %v278_v6, %v277_v5  ;;  %v735_v8 = vld [vmem:[%s1135_s2] ss:$0 sm:$0xff]  ;;  %s1085_s11 = scalar_lea.vmem [#allocation7], %s1067_s23   ;;  %s602_s12 = sshll.u32 (%p1001_p10), %s972_s4, 1 }
  0x49   : > { %v294_v2 = vpack.c.b16 %v292_v1, %v292_v1  ;;  %v736_v11 = vld [vmem:[%s1136_s3] ss:$0 sm:$0xff]  ;;  %s620_s13 = sshll.u32 (%p1001_p10), %s972_s4, 4  ;;  %s348_s20 = ssub.s32 (%p1001_p10), 3, %s602_s12 }
  0x4a   : > { %s1096_s8 = scalar_lea.vmem (%p1001_p10), %s1138_s5, %s620_s13   ;;  %p349_p8 = scmp.lt.s32.totalorder (%p1001_p10), %s348_s20, 2 }
  0x4b   : > { %v302_v3 = vsel %vm300_vm0, %v294_v2, 0 }
  0x4c   : > { %310 = vmatpush.bf16.msra.mxu0 %v302_v3 }
  0x4d   : > { %v334_v20 = vstv %s333_s28 }
  0x50   : > { %311 = vmatpush.bf16.msra.mxu0 %v619_v4 }
  0x53   : > { %600 = vmatmul.msk.bf16.vlgmr.msra.gmra.mxu0 %vm296_vm1, %v279_v7 }
  0xd0   : > { %v313_v9 = vpop.f32.mrf.mxu0 }
  0xd1   : > { %v314_v10 = vadd.f32 %v735_v8, %v313_v9 }
  0xd3   : > { %737 = vtanh.f32 %v314_v10 }
  0xd8   : > { %v315_v12 = vpop.f32.mrf.mxu0 }
  0xd9   : > { %v738_v13 = vpop.eup %737  ;;  %v316_v14 = vadd.f32 %v735_v8, %v315_v12 }
  0xda   : > { %v324_v15 = vmul.f32 %v738_v13, %v736_v11 }
  0xdb   : > { %739 = vtanh.f32 %v316_v14 }
  0xdc   : > { %v327_v16 = vsel %vm326_vm2, %v324_v15, 0.0 }
  0xdd   : > { %328 = vadd.xlane.f32.xlu0 %v327_v16 }
  0xe1   : > { %v740_v17 = vpop.eup %739 }
  0xe2   : > { %v325_v18 = vmul.f32 %v740_v17, %v736_v11 }
  0xe4   : > { %v330_v19 = vsel %vm326_vm2, %v325_v18, 0.0 }
  0xe5   : > { %331 = vadd.xlane.f32.xlu0 %v330_v19 }
 0x150   : > { %v329_v21 = vpop.xlane.xlu0 %328 }
 0x151   : > { %v335_v22 = vadd.f32 %v334_v20, %v329_v21 }
 0x153   : > { %338 = vst.msk [vmem:[%s1085_s11] sm:$0xff] %vm337_vm3, %v335_v22 }
 0x157   : > { %346 = sbr.rel (!%p1001_p10) target bundleno = 387 (0x183), region = 52 }
 0x158   : > { %v332_v23 = vpop.xlane.xlu0 %331 }
 0x159   : > { %v336_v24 = vadd.f32 %v334_v20, %v332_v23 }
 0x15b   : > { %339 = vst.msk [vmem:[%s1085_s11 + $0x8] sm:$0xff] %vm337_vm3, %v336_v24 }
 0x15c   : > { %s1154_s20 = smov (!%p349_p8, %s348_s20), 2 }
 0x15d   : > { %s603_s9 = sshll.u32 %s1154_s20, 3 }
 0x15e   : > { %p606_p11 = scmp.eq.s32.totalorder %s603_s9, 0 }
 0x15f   : > { %s1102_s30 = sshrl.u32 (!%p606_p11), %s1154_s20, 1 }
 0x160   : > { %357 = sbr.rel (%p606_p11) target bundleno = 387 (0x183), region = 56  ;;  %p607_p10 = scmp.le.s32.totalorder (!%p606_p11), %s1102_s30, 0 }
 0x165   : > { %525 = sbr.rel (%p607_p10) target bundleno = 370 (0x172), region = 138  ;;  %s882_s4 = smov (!%p607_p10), %s1096_s8  }
 0x166   : > { %s886_s10 = smov (!%p607_p10), %s1085_s11   ;;  %s890_s14 = smov (!%p607_p10), 0  }
 0x167   : > { %s894_s16 = smov (!%p607_p10), 0  }
 0x16a LB: >> { %v422_v25 = vld [vmem:[%s888_s10] sm:$0xff]  ;;  %v424_v26 = vld [vmem:[%s888_s10 + $0x8] sm:$0xff]  ;;  %s426_s15 = sadd.s32 1, %s892_s14  ;;  %s416_s16 = sadd.s32 1, %s896_s16   ;;  %s896_s16 = sphi %s894_s16, %s416_s16   ;;  %s892_s14 = sphi %s890_s14, %s891_s14   ;;  %s888_s10 = sphi %s886_s10, %s431_s10   ;;  %s884_s4 = sphi %s882_s4, %s432_s4  }
 0x16b   : >> { %423 = vst [vmem:[%s884_s4] sm:$0xff] %v422_v25  ;;  %p427_p6 = scmp.ge.s32.totalorder %s426_s15, %s1102_s30  ;;  %p415_p7 = scmp.ge.s32.totalorder %s416_s16, %s1102_s30 }
 0x16c   : >> { %425 = vst [vmem:[%s884_s4 + $0x8] sm:$0xff] %v424_v26 }
 0x16d   : >> { %s1156_s15 = smov (%p427_p6, %s426_s15), 0  ;;  %418 = sbr.rel (!%p415_p7) target bundleno = 362 (0x16a), region = 144 }
 0x16e   : >> { %s608_s23 = sshll.u32 %s1156_s15, 4  ;;  %s891_s14 = smov %s1156_s15  }
 0x16f   : >> { %s431_s10 = scalar_lea.vmem %s1085_s11, %s608_s23 [#allocation7]   ;;  %s432_s4 = scalar_lea.vmem %s1096_s8, %s608_s23  }
 0x172 PF: > { %s1112_s18 = sand.u32 1, %s1154_s20   ;;  %s621_s19 = sshll.u32 %s1102_s30, 4 }
 0x173   : > { %s437_s29 = scalar_lea.vmem %s1085_s11, %s621_s19 [#allocation7]   ;;  %s439_s6 = scalar_lea.vmem %s1096_s8, %s621_s19  }
 0x174   : > { %p613_p9 = scmp.le.s32.totalorder %s1112_s18, 0 }
 0x175   : > { %s898_s17 = smov (!%p613_p9), %s439_s6   ;;  %s902_s25 = smov (!%p613_p9), %s437_s29  }
 0x176   : > { %539 = sbr.rel (%p613_p9) target bundleno = 387 (0x183), region = 149  ;;  %s906_s28 = smov (!%p613_p9), 0  }
 0x177   : > { %s910_s12 = smov (!%p613_p9), 0  }
 0x17b LB: >> { %v449_v27 = vld [vmem:[%s904_s25] sm:$0xff]  ;;  %s451_s13 = sadd.s32 1, %s908_s28  ;;  %s443_s12 = sadd.s32 1, %s912_s12   ;;  %s912_s12 = sphi %s910_s12, %s443_s12   ;;  %s908_s28 = sphi %s906_s28, %s907_s28   ;;  %s904_s25 = sphi %s902_s25, %s456_s25   ;;  %s900_s17 = sphi %s898_s17, %s457_s17  }
 0x17c   : >> { %450 = vst [vmem:[%s900_s17] sm:$0xff] %v449_v27  ;;  %p452_p12 = scmp.ge.s32.totalorder %s451_s13, %s1112_s18  ;;  %p442_p13 = scmp.ge.s32.totalorder %s443_s12, %s1112_s18 }
 0x17e   : >> { %s1158_s13 = smov (%p452_p12, %s451_s13), 0  ;;  %445 = sbr.rel (!%p442_p13) target bundleno = 379 (0x17b), region = 155 }
 0x17f   : >> { %s614_s11 = sshll.u32 %s1158_s13, 3  ;;  %s907_s28 = smov %s1158_s13  }
 0x180   : >> { %s456_s25 = scalar_lea.vmem %s437_s29, %s614_s11 [#allocation7]   ;;  %s457_s17 = scalar_lea.vmem %s439_s6, %s614_s11  }
 0x183 PF: > { %p17_p0 = scmp.ge.s32.totalorder %s975_s24, 4   ;;  %s1147_s20 = smov %s872_s21 }
 0x184   : > { %s1148_s21 = smov %s876_s22  ;;  %s1149_s22 = smov %s985_s27 }
 0x185   : > { %s1150_s23 = smov %s975_s24  ;;  %19 = sbr.rel (!%p17_p0) target bundleno = 6 (0x6), region = 166 }
 0x18a   :  { %473 = vsyncpa [#allocation4], 1 }
 0x18b   :  { %475 = vsyncpa [#allocation4 + $0x1], 1 }
 0x18c   :  { %476 = vsyncpa [#allocation6], 1 }

</bundles_post_ra>
